<compile_context>
chip_gen: v5e
topology: v5e:2x2
jax: 0.10.0
libtpu: 0.0.40
codegen_flags: <defaults>
</compile_context>

<pallas_src>
from functools import partial

import jax
import jax.numpy as jnp
from jax.experimental import pallas as pl
from jax.experimental.pallas import tpu as pltpu


def _round_up(x, m):
    return ((x + m - 1) // m) * m


def _conv3x3_kernel(x0_ref, x1_ref, m_ref, w_ref, o_ref, win_ref, col_ref, *, W):
    # x0_ref : (1, cp, tn)      flat-spatial tile t (bf16, channels padded to cp)
    # x1_ref : (1, cp, tn)      flat-spatial tile t+1 (halo source)       (bf16)
    # m_ref  : (2, tn)          [left-edge, right-edge] 0/1 column masks  (bf16)
    # w_ref  : (Cout, 9*cp)     folded conv weights, tap stride cp        (bf16)
    # o_ref  : (1, Cout, tn)    output tile, lane-dense                   (f32)
    # win_ref: (cp, tn + halo)  contiguous spatial window scratch         (bf16)
    # col_ref: (9*cp, tn)       im2col operand scratch                    (bf16)
    cp = win_ref.shape[0]
    tn = o_ref.shape[2]
    halo = win_ref.shape[1] - tn

    # Contiguous window [t*tn, t*tn + tn + halo) of the flat (row-stride W) input.
    win_ref[:, :tn] = x0_ref[0]
    win_ref[:, tn:] = x1_ref[0, :, :halo]

    # 0/1 masks killing the wrap-around left/right taps at the image edges
    # (hoisted broadcast so it isn't re-materialized per tap).
    left = jnp.broadcast_to(m_ref[0:1, :], (cp, tn))
    right = jnp.broadcast_to(m_ref[1:2, :], (cp, tn))

    # im2col: 9 statically-shifted views, one sublane-aligned cp-row group per tap.
    for k in range(9):
        dy, dx = divmod(k, 3)
        off = dy * W + dx                       # static per-tap flat offset
        src = win_ref[:, off:off + tn]
        if dx == 0:
            src = src * left
        elif dx == 2:
            src = src * right
        col_ref[k * cp:(k + 1) * cp, :] = src

    # Single folded-K MXU matmul per tile, f32 accumulation, lane-dense store.
    acc = jnp.dot(w_ref[...], col_ref[...], preferred_element_type=jnp.float32)
    o_ref[0] = acc.astype(o_ref.dtype)


def overlap_patch_embed(x_nchw, weight_oihw, *, tile_n=8192, out_dtype=jnp.float32):
    """Conv2d(k=3, s=1, p=1, bias=False) == OverlapPatchEmbed.forward.

    x_nchw:      (B, Cin, H, W)    float32
    weight_oihw: (Cout, Cin, 3, 3) float32 (PyTorch layout)
    returns:     (B, Cout, H, W)   out_dtype (default float32)
    """
    B, Cin, H, W = x_nchw.shape
    Cout = weight_oihw.shape[0]
    cp = _round_up(Cin, 8)                  # sublane-aligned channel stride
    n_flat = H * W                          # exact flat output extent (no column pad)
    halo = _round_up(2 * W + 2, 128)        # max tap offset, rounded for the scratch

    # Tile the flat spatial axis: large tiles (amortize the ~0.35us/step overhead),
    # keep >= 2 grid steps when B == 1 (v7x megacore), rebalance the last tile.
    tile_n = _round_up(min(tile_n, _round_up(n_flat, 128)), 128)
    if B == 1:
        tile_n = min(tile_n, max(128, _round_up(-(-n_flat // 2), 128)))
    tile_n = max(tile_n, halo, 128)
    nt = -(-n_flat // tile_n)
    tile_n = max(_round_up(-(-n_flat // nt), 128), halo, 128)
    nt = -(-n_flat // tile_n)               # (final block may be partial: Pallas
                                            #  masks out-of-bounds output writes)
    l_in = (nt + 1) * tile_n                # +1 tile so the halo block always exists

    # Flat input with row stride W: flat index q holds vertically-padded pixel
    # at row (q-1)//W, col (q-1)%W (one zero element prepended, one zero row
    # above/below the image); channels zero-padded Cin -> cp.  Single pass, bf16.
    x_flat = jnp.zeros((B, cp, l_in), jnp.bfloat16)
    x_flat = x_flat.at[:, :Cin, W + 1:W + 1 + n_flat].set(
        x_nchw.astype(jnp.bfloat16).reshape(B, Cin, n_flat))

    # Edge-column masks over the flat output index p: dx=0 taps are invalid where
    # p % W == 0, dx=2 taps where p % W == W-1 (they would otherwise wrap to the
    # neighbouring image row in the stride-W flat layout).
    pcol = jnp.arange(nt * tile_n, dtype=jnp.int32) % W
    masks = jnp.stack([pcol != 0, pcol != W - 1]).astype(jnp.bfloat16)

    # (Cout, Cin, 3, 3) -> (Cout, 9*cp); contraction index j = (3*dy+dx)*cp + ci.
    w_tap = jnp.transpose(weight_oihw, (0, 2, 3, 1)).reshape(Cout, 9, Cin)
    w2 = jnp.zeros((Cout, 9, cp), jnp.float32).at[:, :, :Cin].set(w_tap)
    w2 = w2.reshape(Cout, 9 * cp).astype(jnp.bfloat16)

    # TODO(synk): an Element-offset input window could drop the duplicate x read
    # (x0/x1 halo trick), but the input is only ~6% of HBM traffic.
    out_flat = pl.pallas_call(
        partial(_conv3x3_kernel, W=W),
        out_shape=jax.ShapeDtypeStruct((B, Cout, n_flat), out_dtype),
        grid_spec=pltpu.PrefetchScalarGridSpec(
            num_scalar_prefetch=0,
            grid=(B, nt),
            in_specs=[
                pl.BlockSpec((1, cp, tile_n), lambda b, t: (b, 0, t)),
                pl.BlockSpec((1, cp, tile_n), lambda b, t: (b, 0, t + 1)),
                pl.BlockSpec((2, tile_n), lambda b, t: (0, t)),
                pl.BlockSpec((Cout, 9 * cp), lambda b, t: (0, 0)),
            ],
            out_specs=pl.BlockSpec((1, Cout, tile_n), lambda b, t: (b, 0, t)),
            scratch_shapes=[
                pltpu.VMEM((cp, tile_n + halo), jnp.bfloat16),
                pltpu.VMEM((9 * cp, tile_n), jnp.bfloat16),
            ],
        ),
        compiler_params=pltpu.CompilerParams(
            dimension_semantics=("parallel", "parallel")),
    )(x_flat, x_flat, masks, w2)

    # Contiguous (free) reshape only — no strip copy, already NCHW.
    return out_flat.reshape(B, Cout, H, W)


if __name__ == "__main__":
    key = jax.random.PRNGKey(0)
    kx, kw = jax.random.split(key)

    conv_ref = partial(jax.lax.conv_general_dilated, window_strides=(1, 1),
                       padding=((1, 1), (1, 1)),
                       dimension_numbers=("NCHW", "OIHW", "NCHW"),
                       precision=jax.lax.Precision.HIGHEST)

    def check(x, w, tile_n):
        out = jax.jit(lambda a, b: overlap_patch_embed(a, b, tile_n=tile_n))(x, w)
        out = jax.block_until_ready(out)
        B, _, H, W = x.shape
        assert out.shape == (B, w.shape[0], H, W), out.shape
        # Tight check: same bf16-rounded operands, f32 accumulation.
        ref_bf = conv_ref(x.astype(jnp.bfloat16).astype(jnp.float32),
                          w.astype(jnp.bfloat16).astype(jnp.float32))
        assert jnp.allclose(out, ref_bf, rtol=1e-3, atol=1e-3), \
            float(jnp.max(jnp.abs(out - ref_bf)))
        # Module-semantics check: full-f32 reference; loose tol (bf16 operands).
        ref = conv_ref(x, w)
        assert jnp.allclose(out, ref, rtol=2e-2, atol=2e-2), \
            float(jnp.max(jnp.abs(out - ref)))

    B, Cin, H, W, Cout = 2, 3, 16, 16, 48    # module defaults: in_c=3, embed_dim=48
    x = jax.random.normal(kx, (B, Cin, H, W), jnp.float32)

    # Deterministic stand-in for nn.Conv2d's kaiming-uniform init (same shape).
    fan_in = Cin * 3 * 3
    weight = jax.random.uniform(kw, (Cout, Cin, 3, 3), jnp.float32,
                                minval=-1.0, maxval=1.0) / jnp.sqrt(fan_in)

    # tile_n=128 at this toy size exercises the multi-tile halo + edge-mask path
    # (grid=(2, 2)).
    check(x, weight, tile_n=128)

    # B=1 path (megacore tile cap) with a different width; grid=(1, 3).
    x1 = jax.random.normal(kx, (1, Cin, 16, 24), jnp.float32)
    check(x1, weight, tile_n=128)

    print("KERNEL_OK")
</pallas_src>

<mosaic_0001>
module attributes {stable_mosaic.version = 11 : i64} {
  func.func @_conv3x3_kernel(%arg0: i32, %arg1: i32, %arg2: memref<1x8x128xbf16, #tpu.memory_space<vmem>>, %arg3: memref<1x8x128xbf16, #tpu.memory_space<vmem>>, %arg4: memref<2x128xbf16, #tpu.memory_space<vmem>>, %arg5: memref<48x72xbf16, #tpu.memory_space<vmem>>, %arg6: memref<1x48x128xf32, #tpu.memory_space<vmem>>, %arg7: memref<8x256xbf16, #tpu.memory_space<vmem>>, %arg8: memref<72x128xbf16, #tpu.memory_space<vmem>>) attributes {dimension_semantics = [#tpu.dimension_semantics<parallel>, #tpu.dimension_semantics<parallel>], iteration_bounds = array<i64: 2, 2>, scalar_prefetch = 0 : i64, scratch_operands = 2 : i64, tpu.core_type = #tpu.core_type<tc>, window_params = [{transform_indices = @transform_0, window_bounds = array<i64: 1, 8, 128>}, {transform_indices = @transform_1, window_bounds = array<i64: 1, 8, 128>}, {transform_indices = @transform_2, window_bounds = array<i64: 2, 128>}, {pipeline_mode = #tpu.pipeline_mode<synchronous>, transform_indices = @transform_3, window_bounds = array<i64: 48, 72>}, {transform_indices = @transform_4, window_bounds = array<i64: 1, 48, 128>}]} {
    %c0 = arith.constant 0 : index
    %c0_0 = arith.constant 0 : index
    %c0_1 = arith.constant 0 : index
    %0 = vector.load %arg2[%c0, %c0_0, %c0_1] : memref<1x8x128xbf16, #tpu.memory_space<vmem>>, vector<1x8x128xbf16>
    %1 = vector.shape_cast %0 : vector<1x8x128xbf16> to vector<8x128xbf16>
    %c0_2 = arith.constant 0 : index
    %c0_3 = arith.constant 0 : index
    %2 = vector.load %arg7[%c0_2, %c0_3] : memref<8x256xbf16, #tpu.memory_space<vmem>>, vector<8x128xbf16>
    tpu.vector_store %arg7[%c0_2, %c0_3], %1 {strides = array<i32>} : memref<8x256xbf16, #tpu.memory_space<vmem>>, vector<8x128xbf16>,
    %c0_4 = arith.constant 0 : index
    %c0_5 = arith.constant 0 : index
    %c0_6 = arith.constant 0 : index
    %3 = vector.load %arg3[%c0_4, %c0_5, %c0_6] : memref<1x8x128xbf16, #tpu.memory_space<vmem>>, vector<1x8x128xbf16>
    %4 = vector.shape_cast %3 : vector<1x8x128xbf16> to vector<8x128xbf16>
    %c0_7 = arith.constant 0 : index
    %c128 = arith.constant 128 : index
    %5 = vector.load %arg7[%c0_7, %c128] : memref<8x256xbf16, #tpu.memory_space<vmem>>, vector<8x128xbf16>
    tpu.vector_store %arg7[%c0_7, %c128], %4 {strides = array<i32>} : memref<8x256xbf16, #tpu.memory_space<vmem>>, vector<8x128xbf16>,
    %c0_8 = arith.constant 0 : index
    %c0_9 = arith.constant 0 : index
    %6 = vector.load %arg4[%c0_8, %c0_9] : memref<2x128xbf16, #tpu.memory_space<vmem>>, vector<1x128xbf16>
    %7 = vector.shape_cast %6 : vector<1x128xbf16> to vector<1x128xbf16>
    %8 = vector.broadcast %7 : vector<1x128xbf16> to vector<8x128xbf16>
    %c1 = arith.constant 1 : index
    %c0_10 = arith.constant 0 : index
    %9 = vector.load %arg4[%c1, %c0_10] : memref<2x128xbf16, #tpu.memory_space<vmem>>, vector<1x128xbf16>
    %10 = vector.shape_cast %9 : vector<1x128xbf16> to vector<1x128xbf16>
    %11 = vector.broadcast %10 : vector<1x128xbf16> to vector<8x128xbf16>
    %c0_11 = arith.constant 0 : index
    %c0_12 = arith.constant 0 : index
    %12 = vector.load %arg7[%c0_11, %c0_12] : memref<8x256xbf16, #tpu.memory_space<vmem>>, vector<8x128xbf16>
    %13 = arith.mulf %12, %8 : vector<8x128xbf16>
    %c0_13 = arith.constant 0 : index
    %c0_14 = arith.constant 0 : index
    %14 = vector.load %arg8[%c0_13, %c0_14] : memref<72x128xbf16, #tpu.memory_space<vmem>>, vector<8x128xbf16>
    tpu.vector_store %arg8[%c0_13, %c0_14], %13 {strides = array<i32>} : memref<72x128xbf16, #tpu.memory_space<vmem>>, vector<8x128xbf16>,
    %c0_15 = arith.constant 0 : index
    %c1_16 = arith.constant 1 : index
    %15 = vector.load %arg7[%c0_15, %c1_16] : memref<8x256xbf16, #tpu.memory_space<vmem>>, vector<8x128xbf16>
    %c8 = arith.constant 8 : index
    %c0_17 = arith.constant 0 : index
    %16 = vector.load %arg8[%c8, %c0_17] : memref<72x128xbf16, #tpu.memory_space<vmem>>, vector<8x128xbf16>
    tpu.vector_store %arg8[%c8, %c0_17], %15 {strides = array<i32>} : memref<72x128xbf16, #tpu.memory_space<vmem>>, vector<8x128xbf16>,
    %c0_18 = arith.constant 0 : index
    %c2 = arith.constant 2 : index
    %17 = vector.load %arg7[%c0_18, %c2] : memref<8x256xbf16, #tpu.memory_space<vmem>>, vector<8x128xbf16>
    %18 = arith.mulf %17, %11 : vector<8x128xbf16>
    %c16 = arith.constant 16 : index
    %c0_19 = arith.constant 0 : index
    %19 = vector.load %arg8[%c16, %c0_19] : memref<72x128xbf16, #tpu.memory_space<vmem>>, vector<8x128xbf16>
    tpu.vector_store %arg8[%c16, %c0_19], %18 {strides = array<i32>} : memref<72x128xbf16, #tpu.memory_space<vmem>>, vector<8x128xbf16>,
    %c0_20 = arith.constant 0 : index
    %c16_21 = arith.constant 16 : index
    %20 = vector.load %arg7[%c0_20, %c16_21] : memref<8x256xbf16, #tpu.memory_space<vmem>>, vector<8x128xbf16>
    %21 = arith.mulf %20, %8 : vector<8x128xbf16>
    %c24 = arith.constant 24 : index
    %c0_22 = arith.constant 0 : index
    %22 = vector.load %arg8[%c24, %c0_22] : memref<72x128xbf16, #tpu.memory_space<vmem>>, vector<8x128xbf16>
    tpu.vector_store %arg8[%c24, %c0_22], %21 {strides = array<i32>} : memref<72x128xbf16, #tpu.memory_space<vmem>>, vector<8x128xbf16>,
    %c0_23 = arith.constant 0 : index
    %c17 = arith.constant 17 : index
    %23 = vector.load %arg7[%c0_23, %c17] : memref<8x256xbf16, #tpu.memory_space<vmem>>, vector<8x128xbf16>
    %c32 = arith.constant 32 : index
    %c0_24 = arith.constant 0 : index
    %24 = vector.load %arg8[%c32, %c0_24] : memref<72x128xbf16, #tpu.memory_space<vmem>>, vector<8x128xbf16>
    tpu.vector_store %arg8[%c32, %c0_24], %23 {strides = array<i32>} : memref<72x128xbf16, #tpu.memory_space<vmem>>, vector<8x128xbf16>,
    %c0_25 = arith.constant 0 : index
    %c18 = arith.constant 18 : index
    %25 = vector.load %arg7[%c0_25, %c18] : memref<8x256xbf16, #tpu.memory_space<vmem>>, vector<8x128xbf16>
    %26 = arith.mulf %25, %11 : vector<8x128xbf16>
    %c40 = arith.constant 40 : index
    %c0_26 = arith.constant 0 : index
    %27 = vector.load %arg8[%c40, %c0_26] : memref<72x128xbf16, #tpu.memory_space<vmem>>, vector<8x128xbf16>
    tpu.vector_store %arg8[%c40, %c0_26], %26 {strides = array<i32>} : memref<72x128xbf16, #tpu.memory_space<vmem>>, vector<8x128xbf16>,
    %c0_27 = arith.constant 0 : index
    %c32_28 = arith.constant 32 : index
    %28 = vector.load %arg7[%c0_27, %c32_28] : memref<8x256xbf16, #tpu.memory_space<vmem>>, vector<8x128xbf16>
    %29 = arith.mulf %28, %8 : vector<8x128xbf16>
    %c48 = arith.constant 48 : index
    %c0_29 = arith.constant 0 : index
    %30 = vector.load %arg8[%c48, %c0_29] : memref<72x128xbf16, #tpu.memory_space<vmem>>, vector<8x128xbf16>
    tpu.vector_store %arg8[%c48, %c0_29], %29 {strides = array<i32>} : memref<72x128xbf16, #tpu.memory_space<vmem>>, vector<8x128xbf16>,
    %c0_30 = arith.constant 0 : index
    %c33 = arith.constant 33 : index
    %31 = vector.load %arg7[%c0_30, %c33] : memref<8x256xbf16, #tpu.memory_space<vmem>>, vector<8x128xbf16>
    %c56 = arith.constant 56 : index
    %c0_31 = arith.constant 0 : index
    %32 = vector.load %arg8[%c56, %c0_31] : memref<72x128xbf16, #tpu.memory_space<vmem>>, vector<8x128xbf16>
    tpu.vector_store %arg8[%c56, %c0_31], %31 {strides = array<i32>} : memref<72x128xbf16, #tpu.memory_space<vmem>>, vector<8x128xbf16>,
    %c0_32 = arith.constant 0 : index
    %c34 = arith.constant 34 : index
    %33 = vector.load %arg7[%c0_32, %c34] : memref<8x256xbf16, #tpu.memory_space<vmem>>, vector<8x128xbf16>
    %34 = arith.mulf %33, %11 : vector<8x128xbf16>
    %c64 = arith.constant 64 : index
    %c0_33 = arith.constant 0 : index
    %35 = vector.load %arg8[%c64, %c0_33] : memref<72x128xbf16, #tpu.memory_space<vmem>>, vector<8x128xbf16>
    tpu.vector_store %arg8[%c64, %c0_33], %34 {strides = array<i32>} : memref<72x128xbf16, #tpu.memory_space<vmem>>, vector<8x128xbf16>,
    %c0_34 = arith.constant 0 : index
    %c0_35 = arith.constant 0 : index
    %36 = vector.load %arg5[%c0_34, %c0_35] : memref<48x72xbf16, #tpu.memory_space<vmem>>, vector<48x72xbf16>
    %c0_36 = arith.constant 0 : index
    %c0_37 = arith.constant 0 : index
    %37 = vector.load %arg8[%c0_36, %c0_37] : memref<72x128xbf16, #tpu.memory_space<vmem>>, vector<72x128xbf16>
    %cst = arith.constant dense<0.000000e+00> : vector<48x128xf32>
    %38 = tpu.matmul %36, %37, %cst {dimension_numbers = #tpu.dot_dimension_numbers<[1], [0], [0], [1], [0, 0, 1, 1], [], []>} : vector<48x72xbf16>, vector<72x128xbf16>, vector<48x128xf32> -> vector<48x128xf32>
    %c0_38 = arith.constant 0 : index
    %c0_39 = arith.constant 0 : index
    %c0_40 = arith.constant 0 : index
    %39 = vector.load %arg6[%c0_38, %c0_39, %c0_40] : memref<1x48x128xf32, #tpu.memory_space<vmem>>, vector<1x48x128xf32>
    %40 = vector.shape_cast %39 : vector<1x48x128xf32> to vector<48x128xf32>
    %41 = vector.shape_cast %38 : vector<48x128xf32> to vector<1x48x128xf32>
    tpu.vector_store %arg6[%c0_38, %c0_39, %c0_40], %41 {strides = array<i32>} : memref<1x48x128xf32, #tpu.memory_space<vmem>>, vector<1x48x128xf32>,
    return
  }
  func.func @transform_0(%arg0: i32, %arg1: i32) -> (i32, i32, i32) {
    %c0_i32 = arith.constant 0 : i32
    %c0_i32_0 = arith.constant 0 : i32
    return %arg0, %c0_i32, %arg1 : i32, i32, i32
  }
  func.func @transform_1(%arg0: i32, %arg1: i32) -> (i32, i32, i32) {
    %c1_i32 = arith.constant 1 : i32
    %0 = arith.addi %arg1, %c1_i32 : i32
    %c0_i32 = arith.constant 0 : i32
    %c0_i32_0 = arith.constant 0 : i32
    return %arg0, %c0_i32, %0 : i32, i32, i32
  }
  func.func @transform_2(%arg0: i32, %arg1: i32) -> (i32, i32) {
    %c0_i32 = arith.constant 0 : i32
    %c0_i32_0 = arith.constant 0 : i32
    return %c0_i32, %arg1 : i32, i32
  }
  func.func @transform_3(%arg0: i32, %arg1: i32) -> (i32, i32) {
    %c0_i32 = arith.constant 0 : i32
    %c0_i32_0 = arith.constant 0 : i32
    %c0_i32_1 = arith.constant 0 : i32
    return %c0_i32, %c0_i32_0 : i32, i32
  }
  func.func @transform_4(%arg0: i32, %arg1: i32) -> (i32, i32, i32) {
    %c0_i32 = arith.constant 0 : i32
    %c0_i32_0 = arith.constant 0 : i32
    return %arg0, %c0_i32, %arg1 : i32, i32, i32
  }
}

</mosaic_0001>

<bundles_post_ra>
// kernel: _lambda_.1
= control target key start
LH: loop header
LB: loop body
LE: loop exit
PB: predicated region body
PF: predicated region fallthrough
CT: control target
= control target key end

     0   :  { %s890_s15 = smov 0   ;;  %s892_s16 = smov 0   ;;  %s1010_s0 = inlined_call_operand.vmem [shape: bf16[2,8,384], index: 0, kind: input, shape index: {}, may-alias: {0,1}]   ;;  %s1011_s1 = inlined_call_operand.vmem [shape: bf16[2,8,384], index: 1, kind: input, shape index: {}, may-alias: {0,1}]   ;;  %s1012_s2 = inlined_call_operand.vmem [shape: bf16[2,256], index: 2, kind: input, shape index: {}]   ;;  %s1013_s3 = inlined_call_operand.vmem [shape: bf16[48,72], index: 3, kind: input, shape index: {}]   ;;  %s1014_s4 = inlined_call_operand.vmem [shape: f32[2,48,256], index: 4, kind: output, shape index: {}]  }
   0x1   :  { %s894_s17 = smov 0   ;;  %s896_s18 = smov 0  }
   0x2   :  { %s898_s19 = smov 0   ;;  %s900_s20 = smov 0  }
   0x3   :  { %s902_s21 = smov 0  }
   0x4 LB: > { %s23_s22 = sadd.s32 1, %s842_s19  ;;  %s26_s23 = sadd.s32 1, %s846_s20  ;;  %s850_s21 = sphi %s902_s21, %s14_s21   ;;  %s846_s20 = sphi %s900_s20, %s1021_s20   ;;  %s842_s19 = sphi %s898_s19, %s1020_s19   ;;  %s838_s18 = sphi %s896_s18, %s1019_s18   ;;  %s834_s17 = sphi %s894_s17, %s1018_s17   ;;  %s830_s16 = sphi %s892_s16, %s1017_s16   ;;  %s826_s15 = sphi %s890_s15, %s1016_s15  }
   0x5   : > { %p24_p0 = scmp.ge.s32.totalorder %s23_s22, 2  ;;  %s666_s24 = sadd.s32 4294967295, %s850_s21  }
   0x6   : > { %p150_p1 = scmp.ne.s32.totalorder %s830_s16, %s826_s15  ;;  %p151_p2 = scmp.eq.s32.totalorder %s666_s24, 3 }
   0x7   : > { %s1023_s22 = smov (%p24_p0, %s23_s22), 0  ;;  %s1025_s23 = smov (!%p24_p0, %s26_s23), %s846_s20 }
   0x8   : > { %s136_s25 = ssub.s32 %s842_s19, %s1023_s22  ;;  %p28_p3 = scmp.ge.s32.totalorder %s1025_s23, 2 }
   0x9   : > { %p670_p4 = scmp.ge.s32.totalorder %s850_s21, 1  ;;  %p936_p5 = por %p151_p2, %p150_p1 }
   0xa   : > { %p208_p6 = scmp.lt.s32.totalorder %s850_s21, 5  ;;  %s1027_s23 = smov (%p28_p3, %s1025_s23), 0 }
   0xb   : > { %s135_s27 = ssub.s32 %s846_s20, %s1027_s23  ;;  %s140_s29 = sadd.s32 1, %s830_s16 }
   0xc   : > { %p209_p7 = pnand %p670_p4, %p208_p6  ;;  %s137_s28 = sor.u32 %s136_s25, %s135_s27 }
   0xd   : > { %p138_p8 = scmp.eq.s32.totalorder %s137_s28, 0  ;;  %p266_p9 = scmp.lt.s32.totalorder (!%p209_p7), %s834_s17, 1 }
   0xe   : > { %212 = sbr.rel (%p209_p7) target bundleno = 453 (0x1c5), region = 36  ;;  %p248_p10 = scmp.lt.s32.totalorder (!%p209_p7), %s838_s18, 1 }
   0xf   : > { %s947_s30 = scalar_select %p138_p8, %s830_s16, %s140_s29  }
  0x10   : > { %p250_p11 = scmp.lt.s32.totalorder (!%p209_p7), %s834_s17, 2  ;;  %s852_s27 = smov (!%p209_p7), 16  }
  0x11   : > { %s853_s28 = smov (!%p209_p7), 34   ;;  %s854_s29 = smov (!%p209_p7), 18  }
  0x12   : > { %s856_s7 = smov (!%p209_p7), 2   ;;  %s256_s8 = sadd.s32 (!%p209_p7), 1, %s834_s17 }
  0x13   : > { %s267_s5 = scalar_select %p266_p9, %s834_s17, 1  ;;  %vm383_vm0 = vcmask 777216   ;;  %vm400_vm1 = vcmask 769024   ;;  %vm340_vm2 = vcmask 908288   ;;  %vm471_vm3 = vcmask 1043456  }
  0x14   : > { %s953_s6 = scalar_select %p248_p10, %s838_s18, 1  ;;  %vm331_vm4 = vcmask 916480   ;;  %vm374_vm5 = vcmask 785408   ;;  %vm313_vm6 = vcmask 1031168   ;;  %vm357_vm7 = vcmask 900096  }
  0x15   : > { %s268_s9 = scalar_lea.vmem %s1012_s2, %s267_s5  ;;  %s855_s5 = smov 32   ;;  %vm294_vm8 = vcmask 1039360   ;;  %vm461_vm9 = vcmask 588800  }
  0x16   : > { %v274_v0 = vld [vmem:[%s268_s9] sm:$0x1]  ;;  %s725_s10 = smul.u32 3, %s953_s6  ;;  %p259_p12 = scmp.lt.s32.totalorder %s256_s8, 2 }
  0x17   : > { %v279_v1 = vshrl.u32 %v274_v0, 16  ;;  %v276_v2 = vpack.i.b16 %v274_v0, %v274_v0  ;;  %s251_s11 = scalar_select %p250_p11, %s834_s17, 2 }
  0x18   : > { %s1029_s8 = smov (!%p259_p12, %s256_s8), 2  ;;  %s857_s24 = smov 95  }
  0x19   : > { %v280_v3 = vpack.i.b16 %v279_v1, %v279_v1  ;;  %v278_v4 = vperm.slane %v276_v2, 0  ;;  %s253_s12 = sadd.s32 %s725_s10, %s251_s11  ;;  %s262_s9 = sadd.s32 %s725_s10, %s1029_s8 }
  0x1a   : > { %s671_s13 = sshll.u32 %s253_s12, 2  ;;  %s672_s11 = sshll.u32 %s262_s9, 2 }
  0x1b   : > { %v282_v5 = vperm.slane %v280_v3, 0  ;;  %v285_v6 = vunpack.c.l.bf16 %v278_v4  ;;  %s255_s25 = scalar_lea.vmem %s1010_s0, %s671_s13  ;;  %s264_s14 = scalar_lea.vmem %s1011_s1, %s672_s11 }
  0x1c   : > { %v270_v7 = vld [vmem:[%s255_s25] sm:$0xf]  ;;  %s858_s25 = smov 94   ;;  %s859_s6 = smov 96  }
  0x1d   : > { %v301_v8 = vunpack.c.l.bf16 %v282_v5  ;;  %271 = vst [vmem:[#allocation2] sm:$0xf] %v270_v7  ;;  %321 = vrot.lane.b32.xlu2 %v285_v6, %s852_s27  ;;  %v272_v13 = vld [vmem:[%s264_s14] sm:$0xf]  ;;  %s860_s10 = smov 126   ;;  %s861_s27 = smov 111  }
  0x1e   : > { %273 = vst [vmem:[#allocation2 + $0x4] sm:$0xf] %v272_v13  ;;  %v707_v5 = vld [vmem:[%s1013_s3] sm:$0xff]  ;;  %v709_v7 = vld [vmem:[%s1013_s3 + $0x10] sm:$0xff]  ;;  %s245_s14 = sand.u32 1, %s826_s15   ;;  %s726_s15 = smul.u32 (%p936_p5), 12, %s838_s18 }
  0x1f   : > { %390 = vrot.lane.b32.xlu0 %v301_v8, %s853_s28  ;;  %347 = vrot.lane.b32.xlu1 %v301_v8, %s854_s29  ;;  %s862_s28 = smov 110   ;;  %s863_s29 = smov 112  }
  0x24   : > { %v283_v9 = vld [vmem:[#allocation2] sm:$0xf] }
  0x25   : > { %v284_v10 = vunpack.c.l.bf16 %v283_v9  ;;  %v387_v14 = vld [vmem:[#allocation2] sm:$0xff] }
  0x26   : > { %v388_v15 = vunpack.c.l.bf16 %v387_v14  ;;  %v389_v16 = vunpack.c.h.bf16 %v387_v14 }
  0x27   : > { %364 = vrot.lane.b32.xlu0 %v285_v6, %s855_s5  ;;  %v286_v11 = vmul.f32 %v285_v6, %v284_v10  ;;  %303 = vrot.lane.b32.xlu1 %v301_v8, %s856_s7  ;;  %s864_s5 = smov 127   ;;  %v708_v6 = vld [vmem:[%s1013_s3 + $0x8] sm:$0xff] }
  0x29   : > { %v287_v12 = vpack.c.bf16 %v286_v11, %v286_v11 }
  0x2b   : > { %288 = vst [vmem:[#allocation3] sm:$0xf] %v287_v12 }
  0x2f   : > { %380 = vrot.lane.b32.xlu1 %v387_v14, %s857_s24  ;;  %s724_s24 = smul.u32 48, %s245_s14 }
  0x77   : > { %v322_v30 = vpop.permute.xlu2 %321 }
  0x78   : > { %v324_v31 = vmul.f32 %v388_v15, %v322_v30  ;;  %v325_v32 = vmul.f32 %v389_v16, %v322_v30 }
  0x7a   : > { %v326_v35 = vpack.c.bf16 %v325_v32, %v324_v31 }
  0x91   : > { %v391_v17 = vpop.permute.xlu0 %390  ;;  %v348_v18 = vpop.permute.xlu1 %347 }
  0x92   : > { %v393_v19 = vmul.f32 %v391_v17, %v388_v15  ;;  %v394_v20 = vmul.f32 %v391_v17, %v389_v16  ;;  %v350_v33 = vmul.f32 %v388_v15, %v348_v18  ;;  %v351_v34 = vmul.f32 %v389_v16, %v348_v18 }
  0x94   : > { %v395_v21 = vpack.c.bf16 %v394_v20, %v393_v19  ;;  %v352_v36 = vpack.c.bf16 %v351_v34, %v350_v33 }
  0x96   : > { %397 = vrot.lane.b32.xlu2 %v395_v21, %s858_s25  ;;  %s247_s25 = scalar_lea.vmem [#allocation4], %s724_s24 }
  0x99   : > { %v365_v22 = vpop.permute.xlu0 %364  ;;  %v304_v23 = vpop.permute.xlu1 %303 }
  0x9a   : > { %v367_v24 = vmul.f32 %v388_v15, %v365_v22  ;;  %v368_v25 = vmul.f32 %v389_v16, %v365_v22  ;;  %v306_v26 = vmul.f32 %v388_v15, %v304_v23  ;;  %v307_v27 = vmul.f32 %v389_v16, %v304_v23 }
  0x9c   : > { %v369_v28 = vpack.c.bf16 %v368_v25, %v367_v24  ;;  %v308_v29 = vpack.c.bf16 %v307_v27, %v306_v26 }
  0x9e   : > { %371 = vrot.lane.b32.xlu0 %v369_v28, %s859_s6  ;;  %310 = vrot.lane.b32.xlu1 %v308_v29, %s860_s10  ;;  %s513_s6 = sadd.s32 (%p936_p5), %s834_s17, %s726_s15 }
  0x9f   : > { %337 = vrot.lane.b32.xlu2 %v387_v14, %s861_s27  ;;  %s704_s10 = sshll.u32 (%p936_p5), %s513_s6, 3 }
  0xa1   : > { %v381_v37 = vpop.permute.xlu1 %380 }
  0xa2   : > { %v382_v38 = vrot.slane %v381_v37, 4 }
  0xa4   : > { %v384_v39 = vsel %vm383_vm0, %v381_v37, %v382_v38 }
  0xa5   : > { %386 = vst [vmem:[#allocation3 + $0x1c] sm:$0xf] %v384_v39 }
  0xa6   : > { %354 = vrot.lane.b32.xlu0 %v352_v36, %s862_s28 }
  0xa7   : > { %328 = vrot.lane.b32.xlu2 %v326_v35, %s863_s29  ;;  %s515_s29 = scalar_lea.vmem (%p936_p5), %s1014_s4, %s704_s10 }
  0xae   : > { %291 = vrot.lane.b32.xlu0 %v387_v14, %s864_s5 }
  0xf0   : > { %v398_v40 = vpop.permute.xlu2 %397 }
  0xf1   : > { %v399_v41 = vrot.slane %v398_v40, 4 }
  0xf3   : > { %v401_v42 = vsel %vm400_vm1, %v398_v40, %v399_v41 }
  0xf4   : > { %403 = vst [vmem:[#allocation3 + $0x20] sm:$0xf] %v401_v42 }
  0xf9   : > { %v338_v43 = vpop.permute.xlu2 %337 }
  0xfa   : > { %v339_v44 = vrot.slane %v338_v43, 4 }
  0xfb   : > { %v418_v45 = vld [vmem:[#allocation3 + $0x20] sm:$0xf] }
  0xfc   : > { %v451_v46 = vunpack.c.l.b16 %v418_v45  ;;  %v341_v47 = vsel %vm340_vm2, %v338_v43, %v339_v44 }
  0xfd   : > { %343 = vst [vmem:[#allocation3 + $0x10] sm:$0xf] %v341_v47 }
  0xfe   : > { %v456_v48 = vpack.c.b16 %v451_v46, %v451_v46 }
 0x100   : > { %v473_v49 = vsel %vm471_vm3, %v456_v48, 0 }
 0x101   : > { %478 = vmatpush.bf16.msra.mxu0 %v473_v49  ;;  %714 = vmatpush.bf16.msra.mxu1 %v473_v49  ;;  %v329_v50 = vpop.permute.xlu2 %328 }
 0x102   : > { %715 = vmatpush.bf16.msra.mxu2 %v473_v49  ;;  %v330_v51 = vrot.slane %v329_v50, 4 }
 0x104   : > { %v332_v52 = vsel %vm331_vm4, %v329_v50, %v330_v51 }
 0x105   : > { %334 = vst [vmem:[#allocation3 + $0xc] sm:$0xf] %v332_v52 }
 0x110   : > { %v372_v53 = vpop.permute.xlu0 %371  ;;  %v311_v54 = vpop.permute.xlu1 %310 }
 0x111   : > { %v373_v55 = vrot.slane %v372_v53, 4  ;;  %v312_v56 = vrot.slane %v311_v54, 4 }
 0x113   : > { %v375_v57 = vsel %vm374_vm5, %v372_v53, %v373_v55  ;;  %v314_v58 = vsel %vm313_vm6, %v311_v54, %v312_v56 }
 0x114   : > { %377 = vst [vmem:[#allocation3 + $0x18] sm:$0xf] %v375_v57 }
 0x115   : > { %316 = vst [vmem:[#allocation3 + $0x8] sm:$0xf] %v314_v58 }
 0x118   : > { %v355_v59 = vpop.permute.xlu0 %354 }
 0x119   : > { %v356_v60 = vrot.slane %v355_v59, 4 }
 0x11b   : > { %v358_v61 = vsel %vm357_vm7, %v355_v59, %v356_v60  ;;  %v713_v62 = vld [vmem:[#allocation3 + $0x18] sm:$0xff] }
 0x11c   : > { %360 = vst [vmem:[#allocation3 + $0x14] sm:$0xf] %v358_v61  ;;  %479 = vmatpush.bf16.msra.mxu0 %v713_v62  ;;  %716 = vmatpush.bf16.msra.mxu1 %v713_v62  ;;  %v711_v3 = vld [vmem:[#allocation3 + $0x8] sm:$0xff] }
 0x11d   : > { %717 = vmatpush.bf16.msra.mxu2 %v713_v62 }
 0x120   : > { %v292_v63 = vpop.permute.xlu0 %291 }
 0x121   : > { %v293_v0 = vrot.slane %v292_v63, 4 }
 0x123   : > { %v295_v1 = vsel %vm294_vm8, %v292_v63, %v293_v0  ;;  %v712_v2 = vld [vmem:[#allocation3 + $0x10] sm:$0xff] }
 0x124   : > { %297 = vst [vmem:[#allocation3 + $0x4] sm:$0xf] %v295_v1  ;;  %480 = vmatpush.bf16.msra.mxu0 %v712_v2  ;;  %718 = vmatpush.bf16.msra.mxu1 %v712_v2 }
 0x125   : > { %719 = vmatpush.bf16.msra.mxu2 %v712_v2 }
 0x128   : > { %481 = vmatpush.bf16.msra.mxu0 %v711_v3  ;;  %720 = vmatpush.bf16.msra.mxu1 %v711_v3 }
 0x129   : > { %721 = vmatpush.bf16.msra.mxu2 %v711_v3 }
 0x12b   : > { %v710_v4 = vld [vmem:[#allocation3] sm:$0xff] }
 0x12c   : > { %482 = vmatpush.bf16.msra.mxu0 %v710_v4  ;;  %722 = vmatpush.bf16.msra.mxu1 %v710_v4 }
 0x12d   : > { %723 = vmatpush.bf16.msra.mxu2 %v710_v4 }
 0x12f   : > { %701 = vmatmul.msk.bf16.vlgmr.msra.gmra.mxu0 %vm461_vm9, %v707_v5  ;;  %702 = vmatmul.msk.bf16.vlgmr.msra.gmra.mxu1 %vm461_vm9, %v708_v6 }
 0x130   : > { %703 = vmatmul.msk.bf16.vlgmr.msra.gmra.mxu2 %vm461_vm9, %v709_v7 }
 0x1ac   : > { %v484_v8 = vpop.f32.mrf.mxu0  ;;  %v489_v9 = vpop.f32.mrf.mxu1 }
 0x1ad   : > { %499 = vst [vmem:[%s247_s25] sm:$0xff] %v484_v8 }
 0x1ae   : > { %501 = vst [vmem:[%s247_s25 + $0x10] sm:$0xff] %v489_v9 }
 0x1b3   : > { %v494_v10 = vpop.f32.mrf.mxu2 }
 0x1b4   : > { %503 = vst [vmem:[%s247_s25 + $0x20] sm:$0xff] %v494_v10  ;;  %v486_v11 = vpop.f32.mrf.mxu0  ;;  %v491_v12 = vpop.f32.mrf.mxu1  ;;  %v554_v14 = vld [vmem:[%s247_s25] sm:$0xff] (%p936_p5) }
 0x1b5   : > { %500 = vst [vmem:[%s247_s25 + $0x8] sm:$0xff] %v486_v11  ;;  %v558_v16 = vld [vmem:[%s247_s25 + $0x10] sm:$0xff] (%p936_p5) }
 0x1b6   : > { %502 = vst [vmem:[%s247_s25 + $0x18] sm:$0xff] %v491_v12 }
 0x1b7   : > { %555 = vst [vmem:[%s515_s29] sm:$0xff] (%p936_p5), %v554_v14 }
 0x1b8   : > { %511 = sbr.rel (!%p936_p5) target bundleno = 453 (0x1c5), region = 40  ;;  %559 = vst [vmem:[%s515_s29 + $0x20] sm:$0xff] (%p936_p5), %v558_v16 }
 0x1bb   : > { %v496_v13 = vpop.f32.mrf.mxu2  ;;  %v562_v18 = vld [vmem:[%s247_s25 + $0x20] sm:$0xff] (%p936_p5) }
 0x1bc   : > { %504 = vst [vmem:[%s247_s25 + $0x28] sm:$0xff] %v496_v13  ;;  %v556_v15 = vld [vmem:[%s247_s25 + $0x8] sm:$0xff] (%p936_p5) }
 0x1bd   : > { %v560_v17 = vld [vmem:[%s247_s25 + $0x18] sm:$0xff]  ;;  %557 = vst [vmem:[%s515_s29 + $0x10] sm:$0xff] %v556_v15 }
 0x1be   : > { %561 = vst [vmem:[%s515_s29 + $0x30] sm:$0xff] %v560_v17 }
 0x1bf   : > { %563 = vst [vmem:[%s515_s29 + $0x40] sm:$0xff] %v562_v18 }
 0x1c3   : > { %v564_v19 = vld [vmem:[%s247_s25 + $0x28] sm:$0xff] }
 0x1c4   : > { %565 = vst [vmem:[%s515_s29 + $0x50] sm:$0xff] %v564_v19 }
 0x1c5 PF: > { %s14_s21 = sadd.s32 1, %s850_s21   ;;  %s1016_s15 = smov %s830_s16 }
 0x1c6   : > { %p11_p13 = scmp.ge.s32.totalorder %s14_s21, 6   ;;  %s1017_s16 = smov %s947_s30 }
 0x1c7   : > { %s1018_s17 = smov %s842_s19  ;;  %s1019_s18 = smov %s846_s20 }
 0x1c8   : > { %s1020_s19 = smov %s1023_s22  ;;  %s1021_s20 = smov %s1027_s23 }
 0x1c9   :  { %13 = sbr.rel (!%p11_p13) target bundleno = 4 (0x4), region = 110 }

</bundles_post_ra>
